<compile_context>
chip_gen: v7x
topology: tpu7x:2x2x1
jax: 0.10.0
libtpu: 0.0.40
codegen_flags: <defaults>
</compile_context>

<pallas_src>
import numpy as np
import jax
import jax.numpy as jnp
from jax.experimental import pallas as pl
from jax.experimental.pallas import tpu as pltpu


_VMEM_LIMIT = 32 * 1024 * 1024


def _round_up(x, m):
    return (x + m - 1) // m * m


def _matmul_kernel(a_ref, b_ref, o_ref):
    o_ref[...] = jnp.dot(a_ref[...], b_ref[...],
                         preferred_element_type=jnp.float32).astype(o_ref.dtype)


def _pick_row_tile(m, cap=512):
    """Sublane (row) tile: multiple of 8, <= cap, >= 2 grid steps when possible."""
    m8 = _round_up(m, 8)
    t = min(cap, m8)
    if m8 // t < 2 and m8 >= 16:
        t = _round_up((m8 + 1) // 2, 8)
    return t


def _pick_col_tile(n, cap=512):
    """Lane (column) tile: multiple of 128 (lane-dense stores), >= 2 steps when possible."""
    n128 = _round_up(n, 128)
    t = min(cap, n128)
    if n128 // t < 2 and n128 >= 256:
        t = _round_up(n128 // 2, 128)
    return t


def _rowwise_matmul(a, w, tm):
    """(M, K) @ (K, N), M tiled by tm (M % tm == 0). Weight w has a constant index_map."""
    M, K = a.shape
    Kw, N = w.shape
    return pl.pallas_call(
        _matmul_kernel,
        out_shape=jax.ShapeDtypeStruct((M, N), jnp.float32),
        grid=(M // tm,),
        in_specs=[
            pl.BlockSpec((tm, K), lambda i: (i, 0)),
            pl.BlockSpec((Kw, N), lambda i: (0, 0)),   # constant: DMA'd once
        ],
        out_specs=pl.BlockSpec((tm, N), lambda i: (i, 0)),
        compiler_params=pltpu.CompilerParams(
            dimension_semantics=("parallel",),
            vmem_limit_bytes=_VMEM_LIMIT),
    )(a, w)


def _colwise_matmul(w, b, tn):
    """(M, K) @ (K, N), N tiled by tn (N % tn == 0). Weight w has a constant index_map."""
    M, K = w.shape
    Kb, N = b.shape
    return pl.pallas_call(
        _matmul_kernel,
        out_shape=jax.ShapeDtypeStruct((M, N), jnp.float32),
        grid=(N // tn,),
        in_specs=[
            pl.BlockSpec((M, K), lambda j: (0, 0)),    # constant: DMA'd once
            pl.BlockSpec((Kb, tn), lambda j: (0, j)),
        ],
        out_specs=pl.BlockSpec((M, tn), lambda j: (0, j)),
        compiler_params=pltpu.CompilerParams(
            dimension_semantics=("parallel",),
            vmem_limit_bytes=_VMEM_LIMIT),
    )(w, b)


def ifft_pallas(x, norm: str = "backward", use_bf16: bool = False):
    """Equivalent of torch.fft.irfftn(x, dim=(-2, -1), norm=norm) for complex input x.

    Output width is the default even W = 2 * (x.shape[-1] - 1).
    """
    x = jnp.asarray(x)
    *lead, H, Wf = x.shape
    assert Wf >= 2, "need at least 2 frequency bins along the last dim"
    W = 2 * (Wf - 1)                       # default irfftn output width (even)
    B = int(np.prod(lead)) if lead else 1

    # ---- host-side constant inverse-DFT matrices (real/imag stacked form) ----
    if norm == "backward":
        scale = 1.0 / (H * W)
    elif norm == "ortho":
        scale = 1.0 / np.sqrt(H * W)
    elif norm == "forward":
        scale = 1.0
    else:
        raise ValueError(norm)

    m = np.arange(H)
    ang_h = 2.0 * np.pi * np.outer(m, m) / H
    CH = np.cos(ang_h)
    SH = np.sin(ang_h)

    k = np.arange(Wf)
    n = np.arange(W)
    ang_w = 2.0 * np.pi * np.outer(k, n) / W
    # Hermitian-symmetry weights: middle bins counted twice, DC/Nyquist once; norm folded in.
    wts = np.where((k > 0) & (k < Wf - 1), 2.0, 1.0)[:, None] * scale
    CW = np.cos(ang_w) * wts
    SW = np.sin(ang_w) * wts

    # Stage-1 weight: [Xr | Xi] @ WB = [Qr | Qi]   (C2R width transform)
    WB = np.block([[CW, SW], [-SW, CW]]).astype(np.float32)        # (2*Wf, 2*W)
    # Stage-2 weight: [CH | -SH] @ [Qr ; Qi] = Y   (complex->real height transform)
    CHSH = np.concatenate([CH, -SH], axis=1).astype(np.float32)    # (H, 2*H)

    cdtype = jnp.bfloat16 if use_bf16 else jnp.float32
    WB = jnp.asarray(WB, dtype=cdtype)
    CHSH = jnp.asarray(CHSH, dtype=cdtype)

    xr = jnp.real(x).astype(cdtype).reshape(B, H, Wf)
    xi = jnp.imag(x).astype(cdtype).reshape(B, H, Wf)

    # ---- stage 1: width transform; all B*H rows batched into one matmul M dim ----
    xcat = jnp.concatenate([xr, xi], axis=-1).reshape(B * H, 2 * Wf)
    M1 = B * H
    tm = _pick_row_tile(M1)
    M1p = _round_up(M1, tm)
    if M1p != M1:
        xcat = jnp.pad(xcat, ((0, M1p - M1), (0, 0)))
    q = _rowwise_matmul(xcat, WB, tm)[:M1]                          # (B*H, 2*W) f32

    # ---- glue relayout: stack Qr/Qi along rows, fold batch into the lane axis ----
    qs = q.reshape(B, H, 2, W).transpose(2, 1, 0, 3).reshape(2 * H, B * W)
    qs = qs.astype(cdtype)
    N2 = B * W
    tn = _pick_col_tile(N2)
    N2p = _round_up(N2, tn)
    if N2p != N2:
        qs = jnp.pad(qs, ((0, 0), (0, N2p - N2)))

    # ---- stage 2: height transform; lane-dense output (H, B*W) ----
    yt = _colwise_matmul(CHSH, qs, tn)[:, :N2]                      # (H, B*W) f32

    y = yt.reshape(H, B, W).transpose(1, 0, 2).reshape(*lead, H, W)
    return y


if __name__ == "__main__":
    # Small NCHW-like spectrum: rfft2 of a (2, 4, 16, 16) real tensor -> (2, 4, 16, 9) complex.
    key = jax.random.PRNGKey(0)
    k1, k2 = jax.random.split(key)
    B, C, H, W = 2, 4, 16, 16
    real_img = jax.random.normal(k1, (B, C, H, W), dtype=jnp.float32)
    x = jnp.fft.rfftn(real_img, axes=(-2, -1))  # complex64, shape (2, 4, 16, 9)
    # Perturb so the spectrum is a "generic" complex input, not exactly Hermitian-consistent.
    x = x + (0.1 * jax.random.normal(k2, x.shape, dtype=jnp.float32)).astype(x.dtype)

    y = ifft_pallas(x, norm="backward")
    jax.block_until_ready(y)

    # Reference check against jnp.fft.irfftn (same semantics as torch.fft.irfftn, norm='backward').
    y_ref = jnp.fft.irfftn(x, axes=(-2, -1), norm="backward")
    assert y.shape == (B, C, H, W)
    np.testing.assert_allclose(np.asarray(y), np.asarray(y_ref), rtol=1e-4, atol=1e-4)

    print("KERNEL_OK")
</pallas_src>

<mosaic_0001>
module attributes {stable_mosaic.version = 11 : i64} {
  func.func @_matmul_kernel(%arg0: i32, %arg1: memref<64x18xf32, #tpu.memory_space<vmem>>, %arg2: memref<18x32xf32, #tpu.memory_space<vmem>>, %arg3: memref<64x32xf32, #tpu.memory_space<vmem>>) attributes {dimension_semantics = [#tpu.dimension_semantics<parallel>], iteration_bounds = array<i64: 2>, scalar_prefetch = 0 : i64, scratch_operands = 0 : i64, tpu.core_type = #tpu.core_type<tc>, window_params = [{transform_indices = @transform_0, window_bounds = array<i64: 64, 18>}, {pipeline_mode = #tpu.pipeline_mode<synchronous>, transform_indices = @transform_1, window_bounds = array<i64: 18, 32>}, {transform_indices = @transform_2, window_bounds = array<i64: 64, 32>}]} {
    %c0 = arith.constant 0 : index
    %c0_0 = arith.constant 0 : index
    %0 = vector.load %arg1[%c0, %c0_0] : memref<64x18xf32, #tpu.memory_space<vmem>>, vector<64x18xf32>
    %c0_1 = arith.constant 0 : index
    %c0_2 = arith.constant 0 : index
    %1 = vector.load %arg2[%c0_1, %c0_2] : memref<18x32xf32, #tpu.memory_space<vmem>>, vector<18x32xf32>
    %cst = arith.constant dense<0.000000e+00> : vector<64x32xf32>
    %2 = tpu.matmul %0, %1, %cst {dimension_numbers = #tpu.dot_dimension_numbers<[1], [0], [0], [1], [0, 0, 1, 1], [], []>} : vector<64x18xf32>, vector<18x32xf32>, vector<64x32xf32> -> vector<64x32xf32>
    %c0_3 = arith.constant 0 : index
    %c0_4 = arith.constant 0 : index
    %3 = vector.load %arg3[%c0_3, %c0_4] : memref<64x32xf32, #tpu.memory_space<vmem>>, vector<64x32xf32>
    tpu.vector_store %arg3[%c0_3, %c0_4], %2 {strides = array<i32>} : memref<64x32xf32, #tpu.memory_space<vmem>>, vector<64x32xf32>,
    return
  }
  func.func @transform_0(%arg0: i32) -> (i32, i32) {
    %c0_i32 = arith.constant 0 : i32
    %c0_i32_0 = arith.constant 0 : i32
    return %arg0, %c0_i32 : i32, i32
  }
  func.func @transform_1(%arg0: i32) -> (i32, i32) {
    %c0_i32 = arith.constant 0 : i32
    %c0_i32_0 = arith.constant 0 : i32
    %c0_i32_1 = arith.constant 0 : i32
    return %c0_i32, %c0_i32_0 : i32, i32
  }
  func.func @transform_2(%arg0: i32) -> (i32, i32) {
    %c0_i32 = arith.constant 0 : i32
    %c0_i32_0 = arith.constant 0 : i32
    return %arg0, %c0_i32 : i32, i32
  }
}

</mosaic_0001>

<bundles_post_ra>
// kernel: tpu_custom_call.1
= control target key start
LH: loop header
LB: loop body
LE: loop exit
PB: predicated region body
PF: predicated region fallthrough
CT: control target
= control target key end

     0   :  { %s445_s9 = smov 0   ;;  %s487_s0 = inlined_call_operand.vmem [shape: f32[128,18], index: 0, kind: input, shape index: {}]   ;;  %s488_s1 = inlined_call_operand.vmem [shape: f32[18,32], index: 1, kind: input, shape index: {}]   ;;  %s489_s2 = inlined_call_operand.vmem [shape: f32[128,32], index: 2, kind: output, shape index: {}]  }
   0x1 LB: > { %s357_s10 = sadd.s32 4294967295, %s428_s9   ;;  %p361_p0 = scmp.ge.s32.totalorder %s428_s9, 1  ;;  %s428_s9 = sphi %s445_s9, %s12_s9  }
   0x2   : > { %p113_p1 = scmp.lt.s32.totalorder %s428_s9, 3 }
   0x4   : > { %p114_p2 = pnand %p361_p0, %p113_p1 }
   0x5   : > { %v155_v0 = vld [vmem:[%s488_s1] sm:$0xff] (!%p114_p2)  ;;  %v156_v1 = vld [vmem:[%s488_s1 + $0x8] sm:$0xff] (!%p114_p2)  ;;  %s362_s15 = sshll.u32 (!%p114_p2), %s357_s10, 3  ;;  %v157_v3 = vld [vmem:[%s488_s1 + $0x10] sm:$0x3] (!%p114_p2)  ;;  %vm183_vm0 = vcmask (!%p114_p2), 1041408  }
   0x6   : > { %117 = sbr.rel (%p114_p2) target bundleno = 237 (0xed), region = 28  ;;  %v406_v2 = vpack.c.bf16 (!%p114_p2), %v156_v1, %v155_v0  ;;  %p136_p3 = scmp.lt.s32.totalorder (!%p114_p2), %s362_s15, 15  ;;  %vm158_vm1 = vcmask (!%p114_p2), 146432   ;;  %vm292_vm2 = vcmask (!%p114_p2), 261120  }
   0x8   : > { %407 = vmatprep.subr.bf16.mxu0 (!%p114_p2), %v406_v2  ;;  %410 = vmatprep.subr.bf16.mxu1 (!%p114_p2), %v406_v2 }
   0x9   : > { %409 = vmatpush3.bf16.msra.mxu0 (!%p114_p2), %v406_v2  ;;  %412 = vmatpush3.bf16.msra.mxu1 (!%p114_p2), %v406_v2 }
   0xa   : > { %392 = vmatprep.subr.msk.mxu0 (!%p114_p2), %vm183_vm0, %v157_v3  ;;  %411 = vmatprep.subr.msk.mxu1 (!%p114_p2), %vm183_vm0, %v157_v3 }
   0xd   : > { %s491_s15 = smov (!%p136_p3, %s362_s15), 15  ;;  %393 = vmatpush3.msk.msra.mxu0 %vm183_vm0, %v157_v3  ;;  %413 = vmatpush3.msk.msra.mxu1 %vm183_vm0, %v157_v3 }
   0xe   : > { %s363_s18 = sshll.u32 %s491_s15, 3 }
   0xf   : > { %s139_s21 = scalar_lea.vmem %s487_s0, %s363_s18  ;;  %s145_s24 = scalar_lea.vmem %s489_s2, %s363_s18 }
  0x10   : > { %v147_v4 = vld [vmem:[%s139_s21] sm:$0xff]  ;;  %v148_v6 = vld [vmem:[%s139_s21 + $0x8] sm:$0xff]  ;;  %v149_v8 = vld [vmem:[%s139_s21 + $0x10] sm:$0xff] }
  0x11   : > { %v151_v5 = vld [vmem:[%s139_s21 + $0x20] sm:$0xff]  ;;  %v152_v7 = vld [vmem:[%s139_s21 + $0x28] sm:$0xff]  ;;  %v153_v9 = vld [vmem:[%s139_s21 + $0x30] sm:$0xff]  ;;  %394 = vmatprep.mubr.msk.f32.mxu0 %vm158_vm1, %v147_v4 }
  0x12   : > { %400 = vmatprep.mubr.msk.f32.mxu1 %vm158_vm1, %v151_v5  ;;  %395 = vmatmul.mubr.msk.f32.vlgmr.msra.gmra.mrb[0].mxu0 %vm158_vm1, %v148_v6  ;;  %v150_v10 = vld [vmem:[%s139_s21 + $0x18] sm:$0xff] }
  0x13   : > { %401 = vmatmul.mubr.msk.f32.vlgmr.msra.gmra.mrb[0].mxu1 %vm158_vm1, %v152_v7  ;;  %397 = vmatprep.mubr.msk.f32.mxu0 %vm158_vm1, %v149_v8  ;;  %v154_v11 = vld [vmem:[%s139_s21 + $0x38] sm:$0xff] }
  0x14   : > { %403 = vmatprep.mubr.msk.f32.mxu1 %vm158_vm1, %v153_v9 }
  0x16   : > { %398 = vmatmul.mubr.msk.f32.gmra.mrb[2].mxu0 %vm158_vm1, %v150_v10 }
  0x17   : > { %404 = vmatmul.mubr.msk.f32.gmra.mrb[2].mxu1 %vm158_vm1, %v154_v11 }
  0xe5   : > { %v396_v12 = vpop.f32.mrb[0].mxu0 }
  0xe6   : > { %v402_v13 = vpop.f32.mrb[0].mxu1  ;;  %294 = vst.msk [vmem:[%s145_s24 + $0x8] sm:$0xff] %vm292_vm2, %v396_v12  ;;  %v253_v14 = vpop.f32.mrb[1].mxu0 }
  0xe7   : > { %298 = vst.msk [vmem:[%s145_s24 + $0x28] sm:$0xff] %vm292_vm2, %v402_v13  ;;  %v273_v15 = vpop.f32.mrb[1].mxu1  ;;  %293 = vst.msk [vmem:[%s145_s24] sm:$0xff] %vm292_vm2, %v253_v14 }
  0xe8   : > { %297 = vst.msk [vmem:[%s145_s24 + $0x20] sm:$0xff] %vm292_vm2, %v273_v15 }
  0xe9   : > { %v399_v16 = vpop.f32.mrb[2].mxu0 }
  0xea   : > { %v405_v17 = vpop.f32.mrb[2].mxu1  ;;  %296 = vst.msk [vmem:[%s145_s24 + $0x18] sm:$0xff] %vm292_vm2, %v399_v16  ;;  %v263_v18 = vpop.f32.mrb[3].mxu0 }
  0xeb   : > { %300 = vst.msk [vmem:[%s145_s24 + $0x38] sm:$0xff] %vm292_vm2, %v405_v17  ;;  %v283_v19 = vpop.f32.mrb[3].mxu1  ;;  %295 = vst.msk [vmem:[%s145_s24 + $0x10] sm:$0xff] %vm292_vm2, %v263_v18 }
  0xec   : > { %299 = vst.msk [vmem:[%s145_s24 + $0x30] sm:$0xff] %vm292_vm2, %v283_v19 }
  0xed PF: > { %s12_s9 = sadd.s32 1, %s428_s9  }
  0xee   : > { %p9_p4 = scmp.ge.s32.totalorder %s12_s9, 4  }
  0xf0   :  { %11 = sbr.rel (!%p9_p4) target bundleno = 1 (0x1), region = 58 }

</bundles_post_ra>
